<compile_context>
chip_gen: v6e
topology: v6e:2x2x1
jax: 0.10.0
libtpu: 0.0.40
codegen_flags: <defaults>
</compile_context>

<pallas_src>
import functools

import numpy as np
import jax
import jax.numpy as jnp
from jax.experimental import pallas as pl
from jax.experimental.pallas import tpu as pltpu

LANE = 128


def _round_up(x, m):
    return ((x + m - 1) // m) * m


def _vmem_limit_bytes():
    """Generation-aware VMEM budget: ~3/4 of physical (48 MiB v7x, 96 MiB v5e/v6e)."""
    phys = 64 * 1024 * 1024
    try:
        info = pltpu.get_tpu_info()
        phys = int(getattr(info, "vmem_capacity_bytes", phys))
    except Exception:  # non-TPU / interpret fallback
        pass
    return (phys * 3) // 4


# --------------------------------------------------------------------------
# Fused path: one kernel, everything VMEM-resident, A read once for both layers
# --------------------------------------------------------------------------
def _fused_gcn_kernel(a_ref, x_ref, w1_ref, b1_ref, w2_ref, b2_ref, o_ref):
    f32, bf16 = jnp.float32, jnp.bfloat16
    a = a_ref[...]                                                   # bf16, reused twice
    xw1 = jnp.dot(x_ref[...], w1_ref[...], preferred_element_type=f32).astype(bf16)
    h = jnp.maximum(jnp.dot(a, xw1, preferred_element_type=f32) + b1_ref[...], 0.0)
    hw2 = jnp.dot(h.astype(bf16), w2_ref[...], preferred_element_type=f32).astype(bf16)
    o_ref[...] = (jnp.dot(a, hw2, preferred_element_type=f32)
                  + b2_ref[...]).astype(o_ref.dtype)


def _forward_fused(a_bf, x_bf, w1_bf, b1, w2_bf, b2, vmem_limit):
    # No grid: whole arrays live in VMEM, kernel runs once.
    # (Single program => one TensorCore on v7x; acceptable at this scale.)
    n_pad = a_bf.shape[0]
    out_pad = w2_bf.shape[1]
    return pl.pallas_call(
        _fused_gcn_kernel,
        out_shape=jax.ShapeDtypeStruct((n_pad, out_pad), jnp.float32),
        compiler_params=pltpu.CompilerParams(vmem_limit_bytes=vmem_limit),
    )(a_bf, x_bf, w1_bf, b1, w2_bf, b2)


# --------------------------------------------------------------------------
# Tiled path, kernel 1: hoisted feature transform  xw1 = X @ W1  (bf16 MXU)
# --------------------------------------------------------------------------
def _ft_kernel(x_ref, w_ref, o_ref):
    o_ref[...] = jnp.dot(x_ref[...], w_ref[...],
                         preferred_element_type=jnp.float32).astype(o_ref.dtype)


def _feature_transform(x, w, *, tm, vmem_limit):
    n, fin = x.shape
    fout = w.shape[1]
    return pl.pallas_call(
        _ft_kernel,
        out_shape=jax.ShapeDtypeStruct((n, fout), jnp.bfloat16),
        grid_spec=pltpu.PrefetchScalarGridSpec(
            num_scalar_prefetch=0,
            grid=(n // tm,),
            in_specs=[pl.BlockSpec((tm, fin), lambda i: (i, 0)),
                      pl.BlockSpec((fin, fout), lambda i: (0, 0))],
            out_specs=pl.BlockSpec((tm, fout), lambda i: (i, 0))),
        compiler_params=pltpu.CompilerParams(
            dimension_semantics=("parallel",),
            vmem_limit_bytes=vmem_limit),
    )(x, w)


# --------------------------------------------------------------------------
# Tiled path, kernel 2: layer-1 aggregation with fused bias+ReLU+W2 epilogue.
#   A is the only streamed operand; XW1 is VMEM-resident (full-extent block,
#   constant index => DMA'd once) and sliced per k-step with pl.ds.
# --------------------------------------------------------------------------
def _agg1_kernel(a_ref, xw_ref, b_ref, w2_ref, o_ref, acc_ref, *, tk):
    k = pl.program_id(1)

    @pl.when(k == 0)
    def _():
        # Fold bias into the accumulator init (saves a broadcast+add per tile).
        acc_ref[...] = jnp.broadcast_to(b_ref[...], acc_ref.shape)

    ks = pl.multiple_of(k * tk, tk)
    acc_ref[...] += jnp.dot(a_ref[...], xw_ref[pl.ds(ks, tk), :],
                            preferred_element_type=jnp.float32)

    @pl.when(k == pl.num_programs(1) - 1)
    def _():
        h = jnp.maximum(acc_ref[...], 0.0).astype(jnp.bfloat16)   # ReLU in f32, bf16 for MXU
        o_ref[...] = jnp.dot(h, w2_ref[...],
                             preferred_element_type=jnp.float32).astype(o_ref.dtype)


def _agg1(a, xw, b, w2, *, tm, tk, vmem_limit):
    n = a.shape[0]
    f = xw.shape[1]
    fo = w2.shape[1]
    return pl.pallas_call(
        functools.partial(_agg1_kernel, tk=tk),
        out_shape=jax.ShapeDtypeStruct((n, fo), jnp.bfloat16),
        grid_spec=pltpu.PrefetchScalarGridSpec(
            num_scalar_prefetch=0,
            grid=(n // tm, n // tk),
            in_specs=[pl.BlockSpec((tm, tk), lambda i, k: (i, k)),   # streamed A (bf16)
                      pl.BlockSpec((n, f), lambda i, k: (0, 0)),     # resident XW1
                      pl.BlockSpec((1, f), lambda i, k: (0, 0)),     # bias (f32)
                      pl.BlockSpec((f, fo), lambda i, k: (0, 0))],   # W2 (bf16)
            out_specs=pl.BlockSpec((tm, fo), lambda i, k: (i, 0)),
            scratch_shapes=[pltpu.VMEM((tm, f), jnp.float32)]),
        compiler_params=pltpu.CompilerParams(
            dimension_semantics=("parallel", "arbitrary"),
            vmem_limit_bytes=vmem_limit),
    )(a, xw, b, w2)


# --------------------------------------------------------------------------
# Tiled path, kernel 3: layer-2 aggregation  out = A @ HW2 + b2  (f32 output)
# --------------------------------------------------------------------------
def _agg2_kernel(a_ref, hw_ref, b_ref, o_ref, acc_ref, *, tk):
    k = pl.program_id(1)

    @pl.when(k == 0)
    def _():
        acc_ref[...] = jnp.broadcast_to(b_ref[...], acc_ref.shape)

    ks = pl.multiple_of(k * tk, tk)
    acc_ref[...] += jnp.dot(a_ref[...], hw_ref[pl.ds(ks, tk), :],
                            preferred_element_type=jnp.float32)

    @pl.when(k == pl.num_programs(1) - 1)
    def _():
        o_ref[...] = acc_ref[...].astype(o_ref.dtype)


def _agg2(a, hw, b, *, tm, tk, vmem_limit):
    n = a.shape[0]
    f = hw.shape[1]
    return pl.pallas_call(
        functools.partial(_agg2_kernel, tk=tk),
        out_shape=jax.ShapeDtypeStruct((n, f), jnp.float32),
        grid_spec=pltpu.PrefetchScalarGridSpec(
            num_scalar_prefetch=0,
            grid=(n // tm, n // tk),
            in_specs=[pl.BlockSpec((tm, tk), lambda i, k: (i, k)),
                      pl.BlockSpec((n, f), lambda i, k: (0, 0)),     # resident HW2
                      pl.BlockSpec((1, f), lambda i, k: (0, 0))],
            out_specs=pl.BlockSpec((tm, f), lambda i, k: (i, 0)),
            scratch_shapes=[pltpu.VMEM((tm, f), jnp.float32)]),
        compiler_params=pltpu.CompilerParams(
            dimension_semantics=("parallel", "arbitrary"),
            vmem_limit_bytes=vmem_limit),
    )(a, hw, b)


# --------------------------------------------------------------------------
# Tile / padding selection for the tiled path
# --------------------------------------------------------------------------
def _choose_tiles(n, tm_req, tk_req):
    n_lane = _round_up(n, LANE)
    if tm_req is None:
        # Default 1024, but keep >= 2 row tiles so the "parallel" row axis can
        # shard across v7x's two TensorCores.
        tm = min(1024, max(LANE, (n_lane // 2) // LANE * LANE))
    else:
        tm = min(_round_up(tm_req, LANE), n_lane)
    tk = tm if tk_req is None else min(_round_up(tk_req, LANE), tm)
    if tm % tk != 0:        # keep lcm(tm, tk) == tm so n_pad = round_up(n, tm)
        tk = tm
    n_pad = _round_up(n, tm)
    return n_pad, tm, tk


# --------------------------------------------------------------------------
# Forward
# --------------------------------------------------------------------------
def gnn_encoder_forward(a_norm, x, w1, b1, w2, b2, *, tm=None, tk=None):
    """GCN forward: conv2(relu(conv1(x))).

    a_norm: (N, N) f32 symmetric-normalized adjacency; x: (N, Fin) f32;
    w1: (Fin, H); b1: (1, H); w2: (H, O); b2: (1, O)  (weights are (in, out),
    i.e. the transpose of PyG's lin.weight).  Pass tm/tk to force the tiled
    multi-block path; by default the fused resident-A path is used whenever
    the padded problem fits comfortably in VMEM.
    """
    n, in_dim = x.shape
    hid = w1.shape[1]
    out_dim = w2.shape[1]

    in_pad = _round_up(in_dim, LANE)
    hid_pad = _round_up(hid, LANE)
    out_pad = _round_up(out_dim, LANE)

    vmem_limit = _vmem_limit_bytes()

    # Estimate the fused-kernel resident footprint: A(bf16) + X + weights +
    # f32/bf16 intermediates.
    n_lane = _round_up(n, LANE)
    fused_bytes = (2 * n_lane * n_lane
                   + 2 * n_lane * in_pad
                   + 6 * n_lane * (hid_pad + out_pad)
                   + 2 * (in_pad * hid_pad + hid_pad * out_pad)
                   + 4 * (hid_pad + out_pad))
    use_fused = (tm is None) and (tk is None) and (fused_bytes <= vmem_limit // 2)

    if use_fused:
        n_pad = n_lane
    else:
        n_pad, tm, tk = _choose_tiles(n, tm, tk)

    bf16 = jnp.bfloat16

    # Build padded operands directly in their kernel dtypes: A is written once
    # as padded bf16 (no padded-f32 materialization).
    def pad2(arr, rows, cols, dt):
        return jnp.pad(arr.astype(dt),
                       ((0, rows - arr.shape[0]), (0, cols - arr.shape[1])))

    a_bf = pad2(a_norm, n_pad, n_pad, bf16)
    x_bf = pad2(x, n_pad, in_pad, bf16)
    w1_bf = pad2(w1, in_pad, hid_pad, bf16)
    w2_bf = pad2(w2, hid_pad, out_pad, bf16)
    b1_p = pad2(b1, 1, hid_pad, jnp.float32)
    b2_p = pad2(b2, 1, out_pad, jnp.float32)

    if use_fused:
        out = _forward_fused(a_bf, x_bf, w1_bf, b1_p, w2_bf, b2_p, vmem_limit)
    else:
        xw1 = _feature_transform(x_bf, w1_bf, tm=tm, vmem_limit=vmem_limit)     # (n_pad, hid_pad) bf16
        hw2 = _agg1(a_bf, xw1, b1_p, w2_bf, tm=tm, tk=tk, vmem_limit=vmem_limit)  # (n_pad, out_pad) bf16
        out = _agg2(a_bf, hw2, b2_p, tm=tm, tk=tk, vmem_limit=vmem_limit)       # (n_pad, out_pad) f32

    return out[:n, :out_dim]


# --------------------------------------------------------------------------
# Glue: dense symmetric-normalized adjacency from edge_index (PyG gcn_norm)
# --------------------------------------------------------------------------
def build_normalized_adjacency(edge_index, num_nodes, *, dtype=jnp.float32):
    src, dst = edge_index[0], edge_index[1]
    a = jnp.zeros((num_nodes, num_nodes), jnp.float32)
    a = a.at[dst, src].add(1.0)                        # messages flow src -> dst
    a = a + jnp.eye(num_nodes, dtype=jnp.float32)      # self loops
    deg = a.sum(axis=1)
    dinv = jnp.where(deg > 0, jax.lax.rsqrt(deg), 0.0)
    return (dinv[:, None] * a * dinv[None, :]).astype(dtype)


# --------------------------------------------------------------------------
# Pure-JAX references
# --------------------------------------------------------------------------
def _mm(a, b):
    return jnp.dot(a, b, precision=jax.lax.Precision.HIGHEST)


def gnn_encoder_ref_f32(a_norm, x, w1, b1, w2, b2):
    h = jnp.maximum(_mm(a_norm, _mm(x, w1)) + b1, 0.0)
    return _mm(a_norm, _mm(h, w2)) + b2


def gnn_encoder_ref_bf16(a_norm, x, w1, b1, w2, b2):
    """Mirrors the kernels' bf16 MXU-operand casts (f32 accumulation throughout)."""
    bf, f32 = jnp.bfloat16, jnp.float32
    c = lambda v: v.astype(bf).astype(f32)
    a = c(a_norm)
    xw1 = c(_mm(c(x), c(w1)))
    h = jnp.maximum(_mm(a, xw1) + b1, 0.0)
    hw2 = c(_mm(c(h), c(w2)))
    return _mm(a, hw2) + b2


# --------------------------------------------------------------------------
if __name__ == "__main__":
    def glorot(k, fan_in, fan_out):
        lim = float(np.sqrt(6.0 / (fan_in + fan_out)))
        return jax.random.uniform(k, (fan_in, fan_out), jnp.float32, -lim, lim)

    def ring_edges(n):
        idx = np.arange(n)
        fwd = np.stack([idx, (idx + 1) % n])
        ei = np.concatenate([fwd, fwd[::-1]], axis=1)          # undirected ring
        return jnp.asarray(np.reshape(ei, (2, -1)), jnp.int32)

    def run_case(key, n, in_dim, hid, out_dim, **fwd_kwargs):
        kx, kw1, kw2, kb1, kb2 = jax.random.split(key, 5)
        x = jax.random.uniform(kx, (n, in_dim), dtype=jnp.float32)
        w1 = glorot(kw1, in_dim, hid)                          # (in, hid) == PyG W1.T
        b1 = 0.1 * jax.random.normal(kb1, (1, hid), jnp.float32)
        w2 = glorot(kw2, hid, out_dim)                         # (hid, out) == PyG W2.T
        b2 = 0.1 * jax.random.normal(kb2, (1, out_dim), jnp.float32)
        a_norm = build_normalized_adjacency(ring_edges(n), n)

        fwd = jax.jit(functools.partial(gnn_encoder_forward, **fwd_kwargs))
        out = np.asarray(jax.block_until_ready(fwd(a_norm, x, w1, b1, w2, b2)))

        # Tight check vs a reference that mimics the kernels' bf16 operand casts.
        ref_bf = np.asarray(gnn_encoder_ref_bf16(a_norm, x, w1, b1, w2, b2))
        np.testing.assert_allclose(out, ref_bf, rtol=1e-2, atol=1e-2)
        # Loose sanity check vs the true f32 module semantics.
        ref_f32 = np.asarray(gnn_encoder_ref_f32(a_norm, x, w1, b1, w2, b2))
        np.testing.assert_allclose(out, ref_f32, rtol=5e-2, atol=5e-2)
        return out

    key = jax.random.PRNGKey(0)
    k_small, k_big = jax.random.split(key)

    # Module-scale case (N=12, dims 4 -> 32 -> 16): fused resident-A path.
    run_case(k_small, 12, 4, 32, 16)

    # Larger case forcing the tiled multi-block path (3x3 grid of 256-tiles).
    run_case(k_big, 600, 4, 32, 16, tm=256, tk=256)

    print("KERNEL_OK")
</pallas_src>

<mosaic_0001>
module attributes {stable_mosaic.version = 11 : i64} {
  func.func @_fused_gcn_kernel(%arg0: memref<128x128xbf16, #tpu.memory_space<vmem>>, %arg1: memref<128x128xbf16, #tpu.memory_space<vmem>>, %arg2: memref<128x128xbf16, #tpu.memory_space<vmem>>, %arg3: memref<1x128xf32, #tpu.memory_space<vmem>>, %arg4: memref<128x128xbf16, #tpu.memory_space<vmem>>, %arg5: memref<1x128xf32, #tpu.memory_space<vmem>>, %arg6: memref<128x128xf32, #tpu.memory_space<vmem>>) attributes {dimension_semantics = [], scalar_prefetch = 0 : i64, scratch_operands = 0 : i64, tpu.core_type = #tpu.core_type<tc>} {
    %c0 = arith.constant 0 : index
    %c0_0 = arith.constant 0 : index
    %0 = vector.load %arg0[%c0, %c0_0] : memref<128x128xbf16, #tpu.memory_space<vmem>>, vector<128x128xbf16>
    %c0_1 = arith.constant 0 : index
    %c0_2 = arith.constant 0 : index
    %1 = vector.load %arg1[%c0_1, %c0_2] : memref<128x128xbf16, #tpu.memory_space<vmem>>, vector<128x128xbf16>
    %c0_3 = arith.constant 0 : index
    %c0_4 = arith.constant 0 : index
    %2 = vector.load %arg2[%c0_3, %c0_4] : memref<128x128xbf16, #tpu.memory_space<vmem>>, vector<128x128xbf16>
    %cst = arith.constant dense<0.000000e+00> : vector<128x128xf32>
    %3 = tpu.matmul %1, %2, %cst {dimension_numbers = #tpu.dot_dimension_numbers<[1], [0], [0], [1], [0, 0, 1, 1], [], []>} : vector<128x128xbf16>, vector<128x128xbf16>, vector<128x128xf32> -> vector<128x128xf32>
    %4 = arith.truncf %3 : vector<128x128xf32> to vector<128x128xbf16>
    %cst_5 = arith.constant dense<0.000000e+00> : vector<128x128xf32>
    %5 = tpu.matmul %0, %4, %cst_5 {dimension_numbers = #tpu.dot_dimension_numbers<[1], [0], [0], [1], [0, 0, 1, 1], [], []>} : vector<128x128xbf16>, vector<128x128xbf16>, vector<128x128xf32> -> vector<128x128xf32>
    %c0_6 = arith.constant 0 : index
    %c0_7 = arith.constant 0 : index
    %6 = vector.load %arg3[%c0_6, %c0_7] : memref<1x128xf32, #tpu.memory_space<vmem>>, vector<1x128xf32>
    %7 = vector.broadcast %6 : vector<1x128xf32> to vector<128x128xf32>
    %8 = arith.addf %5, %7 : vector<128x128xf32>
    %cst_8 = arith.constant 0.000000e+00 : f32
    %9 = vector.broadcast %cst_8 : f32 to vector<128x128xf32>
    %10 = arith.maximumf %8, %9 : vector<128x128xf32>
    %11 = arith.truncf %10 : vector<128x128xf32> to vector<128x128xbf16>
    %c0_9 = arith.constant 0 : index
    %c0_10 = arith.constant 0 : index
    %12 = vector.load %arg4[%c0_9, %c0_10] : memref<128x128xbf16, #tpu.memory_space<vmem>>, vector<128x128xbf16>
    %cst_11 = arith.constant dense<0.000000e+00> : vector<128x128xf32>
    %13 = tpu.matmul %11, %12, %cst_11 {dimension_numbers = #tpu.dot_dimension_numbers<[1], [0], [0], [1], [0, 0, 1, 1], [], []>} : vector<128x128xbf16>, vector<128x128xbf16>, vector<128x128xf32> -> vector<128x128xf32>
    %14 = arith.truncf %13 : vector<128x128xf32> to vector<128x128xbf16>
    %cst_12 = arith.constant dense<0.000000e+00> : vector<128x128xf32>
    %15 = tpu.matmul %0, %14, %cst_12 {dimension_numbers = #tpu.dot_dimension_numbers<[1], [0], [0], [1], [0, 0, 1, 1], [], []>} : vector<128x128xbf16>, vector<128x128xbf16>, vector<128x128xf32> -> vector<128x128xf32>
    %c0_13 = arith.constant 0 : index
    %c0_14 = arith.constant 0 : index
    %16 = vector.load %arg5[%c0_13, %c0_14] : memref<1x128xf32, #tpu.memory_space<vmem>>, vector<1x128xf32>
    %17 = vector.broadcast %16 : vector<1x128xf32> to vector<128x128xf32>
    %18 = arith.addf %15, %17 : vector<128x128xf32>
    %c0_15 = arith.constant 0 : index
    %c0_16 = arith.constant 0 : index
    %19 = vector.load %arg6[%c0_15, %c0_16] : memref<128x128xf32, #tpu.memory_space<vmem>>, vector<128x128xf32>
    tpu.vector_store %arg6[%c0_15, %c0_16], %18 {strides = array<i32>} : memref<128x128xf32, #tpu.memory_space<vmem>>, vector<128x128xf32>,
    return
  }
}

</mosaic_0001>

<bundles_post_ra>
// kernel: gnn_encoder_forward.1
= control target key start
LH: loop header
LB: loop body
LE: loop exit
PB: predicated region body
PF: predicated region fallthrough
CT: control target
= control target key end

     0   :  { %s1217_s2 = inlined_call_operand.vmem [shape: bf16[128,128], index: 2, kind: input, shape index: {}]   ;;  %s1218_s1 = inlined_call_operand.vmem [shape: bf16[128,128], index: 1, kind: input, shape index: {}]   ;;  %s1219_s0 = inlined_call_operand.vmem [shape: bf16[128,128], index: 0, kind: input, shape index: {}]   ;;  %s1220_s4 = inlined_call_operand.vmem [shape: bf16[128,128], index: 4, kind: input, shape index: {}]   ;;  %s1221_s3 = inlined_call_operand.vmem [shape: f32[1,128], index: 3, kind: input, shape index: {}]   ;;  %s1222_s5 = inlined_call_operand.vmem [shape: f32[1,128], index: 5, kind: input, shape index: {}]   ;;  %s1223_s6 = inlined_call_operand.vmem [shape: f32[128,128], index: 6, kind: output, shape index: {}]  }
   0x1   :  { %v968_v0 = vld [vmem:[%s1217_s2 + $0x38] sm:$0xff]   ;;  %v969_v1 = vld [vmem:[%s1217_s2 + $0x30] sm:$0xff]   ;;  %v970_v2 = vld [vmem:[%s1217_s2 + $0x28] sm:$0xff]  }
   0x2   :  { %840 = vmatprep.subr.bf16.mxu0 %v968_v0  ;;  %v971_v3 = vld [vmem:[%s1217_s2 + $0x20] sm:$0xff]   ;;  %v972_v5 = vld [vmem:[%s1217_s2 + $0x18] sm:$0xff]   ;;  %v973_v6 = vld [vmem:[%s1217_s2 + $0x10] sm:$0xff]  }
   0x3   :  { %841 = vmatpush3.bf16.msra.mxu0 %v968_v0  ;;  %v976_v4 = vld [vmem:[%s1218_s1] sm:$0xff]   ;;  %v974_v7 = vld [vmem:[%s1217_s2 + $0x8] sm:$0xff]   ;;  %v978_v10 = vld [vmem:[%s1218_s1 + $0x10] sm:$0xff]  }
   0x4   :  { %842 = vmatprep.subr.bf16.mxu0 %v969_v1  ;;  %856 = vmatprep.mubr.bf16.mxu0 %v976_v4  ;;  %v975_v8 = vld [vmem:[%s1217_s2] sm:$0xff]   ;;  %v977_v9 = vld [vmem:[%s1218_s1 + $0x8] sm:$0xff]   ;;  %v979_v11 = vld [vmem:[%s1218_s1 + $0x18] sm:$0xff]  }
   0x5   :  { %v980_v12 = vld [vmem:[%s1218_s1 + $0x20] sm:$0xff]   ;;  %v981_v13 = vld [vmem:[%s1218_s1 + $0x28] sm:$0xff]   ;;  %v982_v14 = vld [vmem:[%s1218_s1 + $0x30] sm:$0xff]  }
   0x6   :  { %v983_v15 = vld [vmem:[%s1218_s1 + $0x38] sm:$0xff]   ;;  %v1086_v16 = vld [vmem:[%s1219_s0] sm:$0xff]   ;;  %v993_v18 = vld [vmem:[%s1220_s4 + $0x30] sm:$0xff]  }
   0x7   :  { %843 = vmatpush3.bf16.msra.mxu0 %v969_v1  ;;  %888 = vmatprep.mubr.bf16.mxu1 %v1086_v16  ;;  %v992_v17 = vld [vmem:[%s1220_s4 + $0x38] sm:$0xff]   ;;  %v994_v19 = vld [vmem:[%s1220_s4 + $0x28] sm:$0xff]   ;;  %v995_v20 = vld [vmem:[%s1220_s4 + $0x20] sm:$0xff]  }
   0x8   :  { %844 = vmatprep.subr.bf16.mxu0 %v970_v2  ;;  %v996_v21 = vld [vmem:[%s1220_s4 + $0x18] sm:$0xff]   ;;  %v1107_v46 = vld [vmem:[%s1219_s0 + $0x8] sm:$0xff]   ;;  %v1112_v47 = vld [vmem:[%s1219_s0 + $0x10] sm:$0xff]  }
   0x9   :  { %v1119_v48 = vld [vmem:[%s1219_s0 + $0x18] sm:$0xff]   ;;  %v1124_v49 = vld [vmem:[%s1219_s0 + $0x20] sm:$0xff]   ;;  %v1131_v50 = vld [vmem:[%s1219_s0 + $0x28] sm:$0xff]  }
   0xa   :  { %v1136_v51 = vld [vmem:[%s1219_s0 + $0x30] sm:$0xff]   ;;  %v1143_v52 = vld [vmem:[%s1219_s0 + $0x38] sm:$0xff]   ;;  %v998_v54 = vld [vmem:[%s1220_s4 + $0x8] sm:$0xff]  }
   0xb   :  { %845 = vmatpush3.bf16.msra.mxu0 %v970_v2  ;;  %v997_v53 = vld [vmem:[%s1220_s4 + $0x10] sm:$0xff]   ;;  %v999_v55 = vld [vmem:[%s1220_s4] sm:$0xff]  }
   0xc   :  { %846 = vmatprep.subr.bf16.mxu0 %v971_v3  ;;  %v758_v58 = vld [vmem:[%s1221_s3] ss:$0 sm:$0xff] }
   0xf   :  { %847 = vmatpush3.bf16.msra.mxu0 %v971_v3 }
  0x10   :  { %848 = vmatprep.subr.bf16.mxu0 %v972_v5 }
  0x13   :  { %849 = vmatpush3.bf16.msra.mxu0 %v972_v5 }
  0x14   :  { %850 = vmatprep.subr.bf16.mxu0 %v973_v6 }
  0x17   :  { %851 = vmatpush3.bf16.msra.mxu0 %v973_v6 }
  0x18   :  { %852 = vmatprep.subr.bf16.mxu0 %v974_v7 }
  0x1b   :  { %853 = vmatpush3.bf16.msra.mxu0 %v974_v7 }
  0x1c   :  { %854 = vmatprep.subr.bf16.mxu0 %v975_v8 }
  0x1f   :  { %855 = vmatpush3.bf16.msra.mxu0 %v975_v8 }
  0x20   :  { %904 = vmatprep.subr.bf16.mxu0 %v992_v17 }
  0x22   :  { %857 = vmatmul.mubr.bf16.vlgmr.msra.gmra.mxu0 %v977_v9 }
  0x23   :  { %860 = vmatprep.mubr.bf16.mxu0 %v978_v10  ;;  %905 = vmatpush3.bf16.msra.mxu0 %v992_v17 }
  0x24   :  { %906 = vmatprep.subr.bf16.mxu0 %v993_v18 }
  0x27   :  { %907 = vmatpush3.bf16.msra.mxu0 %v993_v18 }
  0x28   :  { %908 = vmatprep.subr.bf16.mxu0 %v994_v19 }
  0x2a   :  { %861 = vmatmul.mubr.bf16.gmra.mxu0 %v979_v11 }
  0x2b   :  { %864 = vmatprep.mubr.bf16.mxu0 %v980_v12  ;;  %909 = vmatpush3.bf16.msra.mxu0 %v994_v19 }
  0x2c   :  { %910 = vmatprep.subr.bf16.mxu0 %v995_v20 }
  0x2f   :  { %911 = vmatpush3.bf16.msra.mxu0 %v995_v20 }
  0x30   :  { %912 = vmatprep.subr.bf16.mxu0 %v996_v21 }
  0x32   :  { %865 = vmatmul.mubr.bf16.gmra.mxu0 %v981_v13 }
  0x33   :  { %868 = vmatprep.mubr.bf16.mxu0 %v982_v14  ;;  %913 = vmatpush3.bf16.msra.mxu0 %v996_v21 }
  0x34   :  { %914 = vmatprep.subr.bf16.mxu0 %v997_v53 }
  0x37   :  { %915 = vmatpush3.bf16.msra.mxu0 %v997_v53 }
  0x38   :  { %916 = vmatprep.subr.bf16.mxu0 %v998_v54 }
  0x3a   :  { %869 = vmatmul.mubr.bf16.gmra.mxu0 %v983_v15 }
  0x3b   :  { %917 = vmatpush3.bf16.msra.mxu0 %v998_v54 }
  0x3c   :  { %918 = vmatprep.subr.bf16.mxu0 %v999_v55 }
  0x3f   :  { %919 = vmatpush3.bf16.msra.mxu0 %v999_v55 }
  0xe2   :  { %v858_v22 = vpop.f32.mrf.mxu0 }
  0xe4   :  { %v202_v23 = vpop.f32.mrf.mxu0 }
  0xe6   :  { %v859_v24 = vpop.f32.mrf.mxu0 }
  0xe7   :  { %v266_v44 = vpack.c.bf16 %v859_v24, %v858_v22 }
  0xe8   :  { %v205_v25 = vpop.f32.mrf.mxu0 }
  0xe9   :  { %v265_v45 = vpack.c.bf16 %v205_v25, %v202_v23 }
  0xea   :  { %v862_v26 = vpop.f32.mrf.mxu0 }
  0xec   :  { %v218_v27 = vpop.f32.mrf.mxu0 }
  0xee   :  { %v863_v28 = vpop.f32.mrf.mxu0 }
  0xef   :  { %v268_v42 = vpack.c.bf16 %v863_v28, %v862_v26 }
  0xf0   :  { %v221_v29 = vpop.f32.mrf.mxu0 }
  0xf1   :  { %v267_v43 = vpack.c.bf16 %v221_v29, %v218_v27 }
  0xf2   :  { %v866_v30 = vpop.f32.mrf.mxu0 }
  0xf4   :  { %v234_v31 = vpop.f32.mrf.mxu0 }
  0xf6   :  { %v867_v32 = vpop.f32.mrf.mxu0 }
  0xf7   :  { %v270_v40 = vpack.c.bf16 %v867_v32, %v866_v30 }
  0xf8   :  { %v237_v33 = vpop.f32.mrf.mxu0 }
  0xf9   :  { %v269_v41 = vpack.c.bf16 %v237_v33, %v234_v31 }
  0xfa   :  { %v870_v34 = vpop.f32.mrf.mxu0 }
  0xfc   :  { %v250_v35 = vpop.f32.mrf.mxu0 }
  0xfe   :  { %v871_v36 = vpop.f32.mrf.mxu0 }
  0xff   :  { %v272_v37 = vpack.c.bf16 %v871_v36, %v870_v34 }
 0x100   :  { %v253_v38 = vpop.f32.mrf.mxu0 }
 0x101   :  { %v271_v39 = vpack.c.bf16 %v253_v38, %v250_v35  ;;  %872 = vmatprep.subr.bf16.mxu1 %v272_v37 }
 0x102   :  { %873 = vmatpush3.bf16.msra.mxu1 %v272_v37 }
 0x103   :  { %874 = vmatprep.subr.bf16.mxu1 %v271_v39 }
 0x106   :  { %875 = vmatpush3.bf16.msra.mxu1 %v271_v39 }
 0x107   :  { %876 = vmatprep.subr.bf16.mxu1 %v270_v40 }
 0x10a   :  { %877 = vmatpush3.bf16.msra.mxu1 %v270_v40 }
 0x10b   :  { %878 = vmatprep.subr.bf16.mxu1 %v269_v41 }
 0x10e   :  { %879 = vmatpush3.bf16.msra.mxu1 %v269_v41 }
 0x10f   :  { %880 = vmatprep.subr.bf16.mxu1 %v268_v42 }
 0x112   :  { %881 = vmatpush3.bf16.msra.mxu1 %v268_v42 }
 0x113   :  { %882 = vmatprep.subr.bf16.mxu1 %v267_v43 }
 0x116   :  { %883 = vmatpush3.bf16.msra.mxu1 %v267_v43 }
 0x117   :  { %884 = vmatprep.subr.bf16.mxu1 %v266_v44 }
 0x11a   :  { %885 = vmatpush3.bf16.msra.mxu1 %v266_v44 }
 0x11b   :  { %886 = vmatprep.subr.bf16.mxu1 %v265_v45 }
 0x11e   :  { %887 = vmatpush3.bf16.msra.mxu1 %v265_v45 }
 0x121   :  { %889 = vmatmul.mubr.bf16.vlgmr.msra.gmra.mxu1 %v1107_v46 }
 0x122   :  { %892 = vmatprep.mubr.bf16.mxu1 %v1112_v47 }
 0x129   :  { %893 = vmatmul.mubr.bf16.gmra.mxu1 %v1119_v48 }
 0x12a   :  { %896 = vmatprep.mubr.bf16.mxu1 %v1124_v49 }
 0x131   :  { %897 = vmatmul.mubr.bf16.gmra.mxu1 %v1131_v50 }
 0x132   :  { %900 = vmatprep.mubr.bf16.mxu1 %v1136_v51 }
 0x139   :  { %901 = vmatmul.mubr.bf16.gmra.mxu1 %v1143_v52 }
 0x13a   :  { %952 = vmatprep.mubr.bf16.mxu1 %v1086_v16 }
 0x1e1   :  { %v890_v56 = vpop.f32.mrf.mxu1 }
 0x1e2   :  { %v371_v62 = vadd.f32 %v890_v56, %v758_v58 }
 0x1e3   :  { %v362_v57 = vpop.f32.mrf.mxu1 }
 0x1e4   :  { %v363_v60 = vadd.f32 %v758_v58, %v362_v57  ;;  %v427_v5 = vmax.f32 %v371_v62, 0.0 }
 0x1e5   :  { %v891_v59 = vpop.f32.mrf.mxu1 }
 0x1e6   :  { %v374_v61 = vadd.f32 %v891_v59, %v758_v58  ;;  %v425_v3 = vmax.f32 %v363_v60, 0.0 }
 0x1e7   :  { %v365_v63 = vpop.f32.mrf.mxu1 }
 0x1e8   :  { %v366_v0 = vadd.f32 %v758_v58, %v365_v63  ;;  %v428_v1 = vmax.f32 %v374_v61, 0.0 }
 0x1e9   :  { %v894_v2 = vpop.f32.mrf.mxu1 }
 0x1ea   :  { %v426_v4 = vmax.f32 %v366_v0, 0.0  ;;  %v442_v8 = vpack.c.bf16 %v428_v1, %v427_v5  ;;  %v387_v12 = vadd.f32 %v894_v2, %v758_v58 }
 0x1eb   :  { %v378_v6 = vpop.f32.mrf.mxu1 }
 0x1ec   :  { %v441_v7 = vpack.c.bf16 %v426_v4, %v425_v3  ;;  %v379_v10 = vadd.f32 %v758_v58, %v378_v6  ;;  %v431_v19 = vmax.f32 %v387_v12, 0.0 }
 0x1ed   :  { %v895_v9 = vpop.f32.mrf.mxu1 }
 0x1ee   :  { %v390_v11 = vadd.f32 %v895_v9, %v758_v58  ;;  %920 = vmatprep.mubr.bf16.mxu0 %v441_v7  ;;  %v429_v17 = vmax.f32 %v379_v10, 0.0 }
 0x1ef   :  { %v381_v13 = vpop.f32.mrf.mxu1  ;;  %921 = vmatmul.mubr.bf16.vlgmr.msra.gmra.mxu0 %v442_v8 }
 0x1f0   :  { %v382_v14 = vadd.f32 %v758_v58, %v381_v13  ;;  %v432_v15 = vmax.f32 %v390_v11, 0.0 }
 0x1f1   :  { %v898_v16 = vpop.f32.mrf.mxu1 }
 0x1f2   :  { %v430_v18 = vmax.f32 %v382_v14, 0.0  ;;  %v444_v22 = vpack.c.bf16 %v432_v15, %v431_v19  ;;  %v403_v26 = vadd.f32 %v898_v16, %v758_v58  ;;  %v775_v16 = vld [vmem:[%s1222_s5] ss:$0 sm:$0xff] }
 0x1f3   :  { %v394_v20 = vpop.f32.mrf.mxu1 }
 0x1f4   :  { %v443_v21 = vpack.c.bf16 %v430_v18, %v429_v17  ;;  %v395_v24 = vadd.f32 %v758_v58, %v394_v20  ;;  %v435_v33 = vmax.f32 %v403_v26, 0.0 }
 0x1f5   :  { %v899_v23 = vpop.f32.mrf.mxu1 }
 0x1f6   :  { %v406_v25 = vadd.f32 %v899_v23, %v758_v58  ;;  %924 = vmatprep.mubr.bf16.mxu0 %v443_v21  ;;  %v433_v31 = vmax.f32 %v395_v24, 0.0 }
 0x1f7   :  { %v397_v27 = vpop.f32.mrf.mxu1  ;;  %925 = vmatmul.mubr.bf16.gmra.mxu0 %v444_v22 }
 0x1f8   :  { %v398_v28 = vadd.f32 %v758_v58, %v397_v27  ;;  %v436_v29 = vmax.f32 %v406_v25, 0.0 }
 0x1f9   :  { %v902_v30 = vpop.f32.mrf.mxu1 }
 0x1fa   :  { %v434_v32 = vmax.f32 %v398_v28, 0.0  ;;  %v446_v36 = vpack.c.bf16 %v436_v29, %v435_v33  ;;  %v419_v40 = vadd.f32 %v902_v30, %v758_v58 }
 0x1fb   :  { %v410_v34 = vpop.f32.mrf.mxu1 }
 0x1fc   :  { %v445_v35 = vpack.c.bf16 %v434_v32, %v433_v31  ;;  %v411_v38 = vadd.f32 %v758_v58, %v410_v34  ;;  %v439_v53 = vmax.f32 %v419_v40, 0.0 }
 0x1fd   :  { %v903_v37 = vpop.f32.mrf.mxu1 }
 0x1fe   :  { %v422_v39 = vadd.f32 %v903_v37, %v758_v58  ;;  %928 = vmatprep.mubr.bf16.mxu0 %v445_v35  ;;  %v437_v44 = vmax.f32 %v411_v38, 0.0 }
 0x1ff   :  { %v413_v41 = vpop.f32.mrf.mxu1  ;;  %929 = vmatmul.mubr.bf16.gmra.mxu0 %v446_v36 }
 0x200   :  { %v414_v42 = vadd.f32 %v758_v58, %v413_v41  ;;  %v440_v43 = vmax.f32 %v422_v39, 0.0 }
 0x202   :  { %v438_v45 = vmax.f32 %v414_v42, 0.0  ;;  %v448_v55 = vpack.c.bf16 %v440_v43, %v439_v53 }
 0x204   :  { %v447_v54 = vpack.c.bf16 %v438_v45, %v437_v44 }
 0x206   :  { %932 = vmatprep.mubr.bf16.mxu0 %v447_v54 }
 0x207   :  { %933 = vmatmul.mubr.bf16.gmra.mxu0 %v448_v55 }
 0x2af   :  { %v922_v56 = vpop.f32.mrf.mxu0 }
 0x2b1   :  { %v547_v57 = vpop.f32.mrf.mxu0 }
 0x2b3   :  { %v923_v59 = vpop.f32.mrf.mxu0 }
 0x2b4   :  { %v611_v14 = vpack.c.bf16 %v923_v59, %v922_v56 }
 0x2b5   :  { %v550_v60 = vpop.f32.mrf.mxu0 }
 0x2b6   :  { %v610_v15 = vpack.c.bf16 %v550_v60, %v547_v57 }
 0x2b7   :  { %v926_v61 = vpop.f32.mrf.mxu0 }
 0x2b9   :  { %v563_v62 = vpop.f32.mrf.mxu0 }
 0x2bb   :  { %v927_v63 = vpop.f32.mrf.mxu0 }
 0x2bc   :  { %v613_v12 = vpack.c.bf16 %v927_v63, %v926_v61 }
 0x2bd   :  { %v566_v0 = vpop.f32.mrf.mxu0 }
 0x2be   :  { %v612_v13 = vpack.c.bf16 %v566_v0, %v563_v62 }
 0x2bf   :  { %v930_v1 = vpop.f32.mrf.mxu0 }
 0x2c1   :  { %v579_v2 = vpop.f32.mrf.mxu0 }
 0x2c3   :  { %v931_v3 = vpop.f32.mrf.mxu0 }
 0x2c4   :  { %v615_v10 = vpack.c.bf16 %v931_v3, %v930_v1 }
 0x2c5   :  { %v582_v58 = vpop.f32.mrf.mxu0 }
 0x2c6   :  { %v614_v11 = vpack.c.bf16 %v582_v58, %v579_v2 }
 0x2c7   :  { %v934_v4 = vpop.f32.mrf.mxu0 }
 0x2c9   :  { %v595_v5 = vpop.f32.mrf.mxu0 }
 0x2cb   :  { %v935_v6 = vpop.f32.mrf.mxu0 }
 0x2cc   :  { %v617_v7 = vpack.c.bf16 %v935_v6, %v934_v4 }
 0x2cd   :  { %v598_v8 = vpop.f32.mrf.mxu0 }
 0x2ce   :  { %v616_v9 = vpack.c.bf16 %v598_v8, %v595_v5  ;;  %936 = vmatprep.subr.bf16.mxu1 %v617_v7 }
 0x2cf   :  { %937 = vmatpush3.bf16.msra.mxu1 %v617_v7 }
 0x2d0   :  { %938 = vmatprep.subr.bf16.mxu1 %v616_v9 }
 0x2d3   :  { %939 = vmatpush3.bf16.msra.mxu1 %v616_v9 }
 0x2d4   :  { %940 = vmatprep.subr.bf16.mxu1 %v615_v10 }
 0x2d7   :  { %941 = vmatpush3.bf16.msra.mxu1 %v615_v10 }
 0x2d8   :  { %942 = vmatprep.subr.bf16.mxu1 %v614_v11 }
 0x2db   :  { %943 = vmatpush3.bf16.msra.mxu1 %v614_v11 }
 0x2dc   :  { %944 = vmatprep.subr.bf16.mxu1 %v613_v12 }
 0x2df   :  { %945 = vmatpush3.bf16.msra.mxu1 %v613_v12 }
 0x2e0   :  { %946 = vmatprep.subr.bf16.mxu1 %v612_v13 }
 0x2e3   :  { %947 = vmatpush3.bf16.msra.mxu1 %v612_v13 }
 0x2e4   :  { %948 = vmatprep.subr.bf16.mxu1 %v611_v14 }
 0x2e7   :  { %949 = vmatpush3.bf16.msra.mxu1 %v611_v14 }
 0x2e8   :  { %950 = vmatprep.subr.bf16.mxu1 %v610_v15 }
 0x2eb   :  { %951 = vmatpush3.bf16.msra.mxu1 %v610_v15 }
 0x2ee   :  { %953 = vmatmul.mubr.bf16.vlgmr.msra.gmra.mxu1 %v1107_v46 }
 0x2ef   :  { %956 = vmatprep.mubr.bf16.mxu1 %v1112_v47 }
 0x2f6   :  { %957 = vmatmul.mubr.bf16.gmra.mxu1 %v1119_v48 }
 0x2f7   :  { %960 = vmatprep.mubr.bf16.mxu1 %v1124_v49 }
 0x2fe   :  { %961 = vmatmul.mubr.bf16.gmra.mxu1 %v1131_v50 }
 0x2ff   :  { %964 = vmatprep.mubr.bf16.mxu1 %v1136_v51 }
 0x306   :  { %965 = vmatmul.mubr.bf16.gmra.mxu1 %v1143_v52 }
 0x3ae   :  { %v954_v17 = vpop.f32.mrf.mxu1 }
 0x3af   :  { %v668_v18 = vadd.f32 %v954_v17, %v775_v16 }
 0x3b0   :  { %v659_v19 = vpop.f32.mrf.mxu1 }
 0x3b1   :  { %724 = vst [vmem:[%s1223_s6 + $0x10] sm:$0xff] %v668_v18  ;;  %v660_v46 = vadd.f32 %v775_v16, %v659_v19 }
 0x3b2   :  { %v955_v47 = vpop.f32.mrf.mxu1 }
 0x3b3   :  { %722 = vst [vmem:[%s1223_s6] sm:$0xff] %v660_v46  ;;  %v671_v48 = vadd.f32 %v955_v47, %v775_v16 }
 0x3b4   :  { %v662_v49 = vpop.f32.mrf.mxu1 }
 0x3b5   :  { %725 = vst [vmem:[%s1223_s6 + $0x18] sm:$0xff] %v671_v48  ;;  %v663_v50 = vadd.f32 %v775_v16, %v662_v49 }
 0x3b6   :  { %v958_v51 = vpop.f32.mrf.mxu1 }
 0x3b7   :  { %723 = vst [vmem:[%s1223_s6 + $0x8] sm:$0xff] %v663_v50  ;;  %v684_v52 = vadd.f32 %v958_v51, %v775_v16 }
 0x3b8   :  { %v675_v20 = vpop.f32.mrf.mxu1 }
 0x3b9   :  { %728 = vst [vmem:[%s1223_s6 + $0x30] sm:$0xff] %v684_v52  ;;  %v676_v21 = vadd.f32 %v775_v16, %v675_v20 }
 0x3ba   :  { %v959_v22 = vpop.f32.mrf.mxu1 }
 0x3bb   :  { %726 = vst [vmem:[%s1223_s6 + $0x20] sm:$0xff] %v676_v21  ;;  %v687_v23 = vadd.f32 %v959_v22, %v775_v16 }
 0x3bc   :  { %v678_v24 = vpop.f32.mrf.mxu1 }
 0x3bd   :  { %729 = vst [vmem:[%s1223_s6 + $0x38] sm:$0xff] %v687_v23  ;;  %v679_v25 = vadd.f32 %v775_v16, %v678_v24 }
 0x3be   :  { %v962_v26 = vpop.f32.mrf.mxu1 }
 0x3bf   :  { %727 = vst [vmem:[%s1223_s6 + $0x28] sm:$0xff] %v679_v25  ;;  %v700_v27 = vadd.f32 %v962_v26, %v775_v16 }
 0x3c0   :  { %v691_v28 = vpop.f32.mrf.mxu1 }
 0x3c1   :  { %732 = vst [vmem:[%s1223_s6 + $0x50] sm:$0xff] %v700_v27  ;;  %v692_v29 = vadd.f32 %v775_v16, %v691_v28 }
 0x3c2   :  { %v963_v30 = vpop.f32.mrf.mxu1 }
 0x3c3   :  { %730 = vst [vmem:[%s1223_s6 + $0x40] sm:$0xff] %v692_v29  ;;  %v703_v31 = vadd.f32 %v963_v30, %v775_v16 }
 0x3c4   :  { %v694_v32 = vpop.f32.mrf.mxu1 }
 0x3c5   :  { %733 = vst [vmem:[%s1223_s6 + $0x58] sm:$0xff] %v703_v31  ;;  %v695_v33 = vadd.f32 %v775_v16, %v694_v32 }
 0x3c6   :  { %v966_v34 = vpop.f32.mrf.mxu1 }
 0x3c7   :  { %731 = vst [vmem:[%s1223_s6 + $0x48] sm:$0xff] %v695_v33  ;;  %v716_v35 = vadd.f32 %v966_v34, %v775_v16 }
 0x3c8   :  { %v707_v36 = vpop.f32.mrf.mxu1 }
 0x3c9   :  { %736 = vst [vmem:[%s1223_s6 + $0x70] sm:$0xff] %v716_v35  ;;  %v708_v37 = vadd.f32 %v775_v16, %v707_v36 }
 0x3ca   :  { %v967_v38 = vpop.f32.mrf.mxu1 }
 0x3cb   :  { %734 = vst [vmem:[%s1223_s6 + $0x60] sm:$0xff] %v708_v37  ;;  %v719_v39 = vadd.f32 %v967_v38, %v775_v16 }
 0x3cc   :  { %v710_v40 = vpop.f32.mrf.mxu1 }
 0x3cd   :  { %737 = vst [vmem:[%s1223_s6 + $0x78] sm:$0xff] %v719_v39  ;;  %v711_v41 = vadd.f32 %v775_v16, %v710_v40 }
 0x3cf   :  { %735 = vst [vmem:[%s1223_s6 + $0x68] sm:$0xff] %v711_v41 }

</bundles_post_ra>
